<compile_context>
chip_gen: v7x
topology: tpu7x:2x2x1
jax: 0.10.0
libtpu: 0.0.40
codegen_flags: <defaults>
</compile_context>

<pallas_src>
import jax
import jax.numpy as jnp
from jax import lax
from jax.experimental import pallas as pl
from jax.experimental.pallas import tpu as pltpu

# ---- Model hyper-parameters (same structure as the torch module, shrunk) ----
INPUT_DIM = 4            # input_dim (channels of the one-hot sequence)
SEQ_LEN = 32             # sequence_length (chosen so the flattened features are 128 = lane-dense)
NUM_CONV_LAYERS = 2      # kernel below statically unrolls exactly these two layers
N_KERNELS = [8, 16]
KERNEL_SIZES = [3, 3]    # 'same' padding assumption requires odd kernel sizes
POOL_EVERY = 1           # pool after every conv layer (torch default behaviour here)
POOL_K = 2
BATCH = 2

# Derived static shapes.
C0, C1, C2 = INPUT_DIM, N_KERNELS[0], N_KERNELS[1]
L0 = SEQ_LEN
L1 = L0 // POOL_K        # after conv1 ('same') + pool
L2 = L1 // POOL_K        # after conv2 ('same') + pool
FEATURES = C2 * L2       # fc in_features (channel-major flatten) = 128

assert all(k % 2 == 1 for k in KERNEL_SIZES), "padding=K//2 is 'same' only for odd K"
assert L0 % POOL_K == 0 and L1 % POOL_K == 0, "exact (floor-free) pooling assumed"
assert L2 > 0 and (L2 & (L2 - 1)) == 0, "flatten one-hot uses a power-of-two modulo mask"


# --------------------------------------------------------------------------------------
# In-kernel helpers (traced Python, statically unrolled).
# --------------------------------------------------------------------------------------
def _one_hot_f32(shape, cond):
    """{0,1} float32 matrix from a predicate over (row, col) int32 iotas."""
    ri = lax.broadcasted_iota(jnp.int32, shape, 0)
    ci = lax.broadcasted_iota(jnp.int32, shape, 1)
    return jnp.where(cond(ri, ci), 1.0, 0.0).astype(jnp.float32)


def _conv_relu(pad_ref, w_ref, b_ref, *, batch, length, ksize):
    """'same' Conv1d (odd ksize) + bias + ReLU with the batch folded into MXU rows.

    pad_ref : (batch, length + ksize - 1, Cin) zero-padded activations in VMEM scratch.
    w_ref   : (ksize * Cin, Cout) im2col-ordered weights.
    Returns (batch * length, Cout) float32, rows ordered batch-major.
    """
    taps = []
    for k in range(ksize):                                   # K shifted views of the halo
        taps.append(jnp.concatenate(
            [pad_ref[b, k:k + length, :] for b in range(batch)], axis=0))
    x = jnp.concatenate(taps, axis=1)                        # (batch*length, ksize*Cin)
    acc = jnp.dot(x, w_ref[...], preferred_element_type=jnp.float32) + b_ref[...]
    return jnp.maximum(acc, 0.0)


def _max_pool_rows(a, *, rows, pool):
    """MaxPool1d(pool) over batch-major rows as a max of one-hot row selections.

    Exact {0,1} selection matmuls replace strided slices / reshapes: one vectorised
    epilogue, no per-row masked stores, and only well-supported Mosaic ops.
    """
    out_rows = rows // pool
    picked = []
    for p in range(pool):
        sel = _one_hot_f32((out_rows, rows), lambda r, c, p=p: c == pool * r + p)
        picked.append(jnp.dot(sel, a, preferred_element_type=jnp.float32))
    m = picked[0]
    for q in picked[1:]:
        m = jnp.maximum(m, q)
    return m


# --------------------------------------------------------------------------------------
# The fused kernel.
# --------------------------------------------------------------------------------------
def fused_cnn_kernel(x_ref, w1_ref, b1_ref, w2_ref, b2_ref, fcw_ref, fcb_ref,
                     out_ref, feat_ref, pad0_ref, pad1_ref):
    batch = x_ref.shape[0]
    k1, k2 = KERNEL_SIZES
    off1, off2 = k1 // 2, k2 // 2

    # ---- layer 1: zero-padded VMEM halo -> im2col conv -> bias + ReLU -> maxpool ----
    pad0_ref[...] = jnp.zeros(pad0_ref.shape, jnp.float32)
    for b in range(batch):
        pad0_ref[b, off1:off1 + L0, :] = x_ref[b, :, :]
    a1 = _conv_relu(pad0_ref, w1_ref, b1_ref, batch=batch, length=L0, ksize=k1)
    h1 = _max_pool_rows(a1, rows=batch * L0, pool=POOL_K)          # (batch*L1, C1)

    # ---- layer 2 ----
    pad1_ref[...] = jnp.zeros(pad1_ref.shape, jnp.float32)
    for b in range(batch):
        pad1_ref[b, off2:off2 + L1, :] = h1[b * L1:(b + 1) * L1, :]
    a2 = _conv_relu(pad1_ref, w2_ref, b2_ref, batch=batch, length=L1, ksize=k2)
    h2 = _max_pool_rows(a2, rows=batch * L1, pool=POOL_K)          # (batch*L2, C2)

    # ---- channel-major flatten: feats[b, c*L2 + l] = h2[b*L2 + l, c] ----
    # (matches torch's x.view(B, -1) on an (B, C, L) tensor).  Built with exact one-hot
    # matmuls so the features land as a single lane-dense (B, 128) store.
    rep = _one_hot_f32((C2, FEATURES),
                       lambda c, f: (f >= c * L2) & (f < (c + 1) * L2))      # c == f // L2
    pos = _one_hot_f32((batch * L2, FEATURES),
                       lambda r, f: jnp.bitwise_and(f - r, L2 - 1) == 0)     # f % L2 == r % L2
    seg = _one_hot_f32((batch, batch * L2),
                       lambda b, r: (r >= b * L2) & (r < (b + 1) * L2))      # b == r // L2
    feats = jnp.dot(seg,
                    jnp.dot(h2, rep, preferred_element_type=jnp.float32) * pos,
                    preferred_element_type=jnp.float32)                      # (batch, FEATURES)
    feat_ref[...] = feats

    # ---- fc head fused in: VPU broadcast-multiply + lane reduction ----
    out_ref[...] = jnp.sum(feats * fcw_ref[...], axis=1, keepdims=True) + fcb_ref[...]


def cnn_forward(x, w1, b1, w2, b2, fc_w, fc_b):
    """x: (B, seq_len, input_dim) channels-last, same input contract as the torch module."""
    batch = x.shape[0]
    k1, k2 = KERNEL_SIZES
    return pl.pallas_call(
        fused_cnn_kernel,
        out_shape=(jax.ShapeDtypeStruct((batch, 1), jnp.float32),
                   jax.ShapeDtypeStruct((batch, FEATURES), jnp.float32)),
        grid=(1,),
        in_specs=[
            pl.BlockSpec((batch, L0, C0), lambda i: (0, 0, 0)),
            pl.BlockSpec((k1 * C0, C1), lambda i: (0, 0)),
            pl.BlockSpec((1, C1), lambda i: (0, 0)),
            pl.BlockSpec((k2 * C1, C2), lambda i: (0, 0)),
            pl.BlockSpec((1, C2), lambda i: (0, 0)),
            pl.BlockSpec((1, FEATURES), lambda i: (0, 0)),
            pl.BlockSpec((1, 1), lambda i: (0, 0)),
        ],
        out_specs=(pl.BlockSpec((batch, 1), lambda i: (0, 0)),
                   pl.BlockSpec((batch, FEATURES), lambda i: (0, 0))),
        scratch_shapes=[
            pltpu.VMEM((batch, L0 + 2 * (k1 // 2), C0), jnp.float32),   # padded input halo
            pltpu.VMEM((batch, L1 + 2 * (k2 // 2), C1), jnp.float32),   # padded pooled-1 halo
        ],
        compiler_params=pltpu.CompilerParams(dimension_semantics=("arbitrary",)),
    )(x, w1, b1, w2, b2, fc_w, fc_b)


@jax.jit
def forward(x, params):
    return cnn_forward(x, params["w1"], params["b1"], params["w2"], params["b2"],
                       params["fc_w"], params["fc_b"])


# --------------------------------------------------------------------------------------
# Parameters + pure-JAX reference (for a numerical check in __main__).
# --------------------------------------------------------------------------------------
def init_params(key):
    """Synthetic params with nn.Conv1d / nn.Linear style uniform init.

    Conv weights are stored in im2col layout (K*Cin, Cout); relative to torch's
    (Cout, Cin, K) layout this is transpose(2, 1, 0).reshape(K*Cin, Cout).
    """
    kw1, kb1, kw2, kb2, kfw, kfb = jax.random.split(key, 6)

    def conv_init(kw, kb, ksize, cin, cout):
        bound = 1.0 / float(cin * ksize) ** 0.5
        w = jax.random.uniform(kw, (ksize, cin, cout), jnp.float32, -bound, bound)
        b = jax.random.uniform(kb, (1, cout), jnp.float32, -bound, bound)
        return w.reshape(ksize * cin, cout), b

    params = {}
    params["w1"], params["b1"] = conv_init(kw1, kb1, KERNEL_SIZES[0], C0, C1)
    params["w2"], params["b2"] = conv_init(kw2, kb2, KERNEL_SIZES[1], C1, C2)
    bound = 1.0 / float(FEATURES) ** 0.5
    params["fc_w"] = jax.random.uniform(kfw, (1, FEATURES), jnp.float32, -bound, bound)
    params["fc_b"] = jax.random.uniform(kfb, (1, 1), jnp.float32, -bound, bound)
    return params


def reference_forward(x, params):
    """Plain-XLA reference of the same forward pass (channels-last activations)."""
    def conv_relu_pool(h, w_col, b, ksize):
        bsz, length, cin = h.shape
        cout = w_col.shape[1]
        pad = ksize // 2
        hp = jnp.pad(h, ((0, 0), (pad, pad), (0, 0)))
        acc = jnp.zeros((bsz, length, cout), jnp.float32)
        for k in range(ksize):
            acc = acc + jnp.einsum("blc,cd->bld", hp[:, k:k + length, :],
                                   w_col[k * cin:(k + 1) * cin, :],
                                   precision=lax.Precision.HIGHEST)
        acc = jnp.maximum(acc + b, 0.0)
        lp = length // POOL_K
        return jnp.max(acc[:, :lp * POOL_K, :].reshape(bsz, lp, POOL_K, cout), axis=2)

    h = x
    for w_col, b, ksize in ((params["w1"], params["b1"], KERNEL_SIZES[0]),
                            (params["w2"], params["b2"], KERNEL_SIZES[1])):
        h = conv_relu_pool(h, w_col, b, ksize)
    feats = jnp.transpose(h, (0, 2, 1)).reshape(h.shape[0], -1)   # channel-major flatten
    out = jnp.sum(feats * params["fc_w"], axis=1, keepdims=True) + params["fc_b"]
    return out, feats


if __name__ == "__main__":
    root = jax.random.PRNGKey(0)
    kx, kp = jax.random.split(root)
    x = jax.random.normal(kx, (BATCH, SEQ_LEN, INPUT_DIM), jnp.float32)
    params = init_params(kp)

    out, feats = forward(x, params)
    jax.block_until_ready((out, feats))

    assert out.shape == (BATCH, 1), out.shape
    assert feats.shape == (BATCH, FEATURES), feats.shape

    ref_out, ref_feats = reference_forward(x, params)
    assert bool(jnp.allclose(feats, ref_feats, rtol=2e-2, atol=2e-2))
    assert bool(jnp.allclose(out, ref_out, rtol=2e-2, atol=2e-2))

    print("KERNEL_OK")
</pallas_src>

<mosaic_0001>
module attributes {stable_mosaic.version = 11 : i64} {
  func.func @fused_cnn_kernel(%arg0: i32, %arg1: memref<2x32x4xf32, #tpu.memory_space<vmem>>, %arg2: memref<12x8xf32, #tpu.memory_space<vmem>>, %arg3: memref<1x8xf32, #tpu.memory_space<vmem>>, %arg4: memref<24x16xf32, #tpu.memory_space<vmem>>, %arg5: memref<1x16xf32, #tpu.memory_space<vmem>>, %arg6: memref<1x128xf32, #tpu.memory_space<vmem>>, %arg7: memref<1x1xf32, #tpu.memory_space<vmem>>, %arg8: memref<2x1xf32, #tpu.memory_space<vmem>>, %arg9: memref<2x128xf32, #tpu.memory_space<vmem>>, %arg10: memref<2x34x4xf32, #tpu.memory_space<vmem>>, %arg11: memref<2x18x8xf32, #tpu.memory_space<vmem>>) attributes {dimension_semantics = [#tpu.dimension_semantics<arbitrary>], iteration_bounds = array<i64: 1>, scalar_prefetch = 0 : i64, scratch_operands = 2 : i64, tpu.core_type = #tpu.core_type<tc>, window_params = [{pipeline_mode = #tpu.pipeline_mode<synchronous>, transform_indices = @transform_0, window_bounds = array<i64: 2, 32, 4>}, {pipeline_mode = #tpu.pipeline_mode<synchronous>, transform_indices = @transform_1, window_bounds = array<i64: 12, 8>}, {pipeline_mode = #tpu.pipeline_mode<synchronous>, transform_indices = @transform_2, window_bounds = array<i64: 1, 8>}, {pipeline_mode = #tpu.pipeline_mode<synchronous>, transform_indices = @transform_3, window_bounds = array<i64: 24, 16>}, {pipeline_mode = #tpu.pipeline_mode<synchronous>, transform_indices = @transform_4, window_bounds = array<i64: 1, 16>}, {pipeline_mode = #tpu.pipeline_mode<synchronous>, transform_indices = @transform_5, window_bounds = array<i64: 1, 128>}, {pipeline_mode = #tpu.pipeline_mode<synchronous>, transform_indices = @transform_6, window_bounds = array<i64: 1, 1>}, {pipeline_mode = #tpu.pipeline_mode<synchronous>, transform_indices = @transform_7, window_bounds = array<i64: 2, 1>}, {pipeline_mode = #tpu.pipeline_mode<synchronous>, transform_indices = @transform_8, window_bounds = array<i64: 2, 128>}]} {
    %cst = arith.constant 0.000000e+00 : f32
    %0 = vector.broadcast %cst : f32 to vector<2x34x4xf32>
    %c0 = arith.constant 0 : index
    %c0_0 = arith.constant 0 : index
    %c0_1 = arith.constant 0 : index
    %1 = vector.load %arg10[%c0, %c0_0, %c0_1] : memref<2x34x4xf32, #tpu.memory_space<vmem>>, vector<2x34x4xf32>
    tpu.vector_store %arg10[%c0, %c0_0, %c0_1], %0 {strides = array<i32>} : memref<2x34x4xf32, #tpu.memory_space<vmem>>, vector<2x34x4xf32>,
    %c0_2 = arith.constant 0 : index
    %c0_3 = arith.constant 0 : index
    %c0_4 = arith.constant 0 : index
    %2 = vector.load %arg1[%c0_2, %c0_3, %c0_4] : memref<2x32x4xf32, #tpu.memory_space<vmem>>, vector<1x32x4xf32>
    %3 = vector.shape_cast %2 : vector<1x32x4xf32> to vector<32x4xf32>
    %c0_5 = arith.constant 0 : index
    %c1 = arith.constant 1 : index
    %c0_6 = arith.constant 0 : index
    %4 = vector.load %arg10[%c0_5, %c1, %c0_6] : memref<2x34x4xf32, #tpu.memory_space<vmem>>, vector<1x32x4xf32>
    %5 = vector.shape_cast %4 : vector<1x32x4xf32> to vector<32x4xf32>
    %6 = vector.shape_cast %3 : vector<32x4xf32> to vector<1x32x4xf32>
    tpu.vector_store %arg10[%c0_5, %c1, %c0_6], %6 {strides = array<i32>} : memref<2x34x4xf32, #tpu.memory_space<vmem>>, vector<1x32x4xf32>,
    %c1_7 = arith.constant 1 : index
    %c0_8 = arith.constant 0 : index
    %c0_9 = arith.constant 0 : index
    %7 = vector.load %arg1[%c1_7, %c0_8, %c0_9] : memref<2x32x4xf32, #tpu.memory_space<vmem>>, vector<1x32x4xf32>
    %8 = vector.shape_cast %7 : vector<1x32x4xf32> to vector<32x4xf32>
    %c1_10 = arith.constant 1 : index
    %c1_11 = arith.constant 1 : index
    %c0_12 = arith.constant 0 : index
    %9 = vector.load %arg10[%c1_10, %c1_11, %c0_12] : memref<2x34x4xf32, #tpu.memory_space<vmem>>, vector<1x32x4xf32>
    %10 = vector.shape_cast %9 : vector<1x32x4xf32> to vector<32x4xf32>
    %11 = vector.shape_cast %8 : vector<32x4xf32> to vector<1x32x4xf32>
    tpu.vector_store %arg10[%c1_10, %c1_11, %c0_12], %11 {strides = array<i32>} : memref<2x34x4xf32, #tpu.memory_space<vmem>>, vector<1x32x4xf32>,
    %c0_13 = arith.constant 0 : index
    %c0_14 = arith.constant 0 : index
    %c0_15 = arith.constant 0 : index
    %12 = vector.load %arg10[%c0_13, %c0_14, %c0_15] : memref<2x34x4xf32, #tpu.memory_space<vmem>>, vector<1x32x4xf32>
    %13 = vector.shape_cast %12 : vector<1x32x4xf32> to vector<32x4xf32>
    %c1_16 = arith.constant 1 : index
    %c0_17 = arith.constant 0 : index
    %c0_18 = arith.constant 0 : index
    %14 = vector.load %arg10[%c1_16, %c0_17, %c0_18] : memref<2x34x4xf32, #tpu.memory_space<vmem>>, vector<1x32x4xf32>
    %15 = vector.shape_cast %14 : vector<1x32x4xf32> to vector<32x4xf32>
    %16 = tpu.concatenate %13, %15 in 0 : vector<32x4xf32>, vector<32x4xf32> -> vector<64x4xf32>
    %c0_19 = arith.constant 0 : index
    %c1_20 = arith.constant 1 : index
    %c0_21 = arith.constant 0 : index
    %17 = vector.load %arg10[%c0_19, %c1_20, %c0_21] : memref<2x34x4xf32, #tpu.memory_space<vmem>>, vector<1x32x4xf32>
    %18 = vector.shape_cast %17 : vector<1x32x4xf32> to vector<32x4xf32>
    %c1_22 = arith.constant 1 : index
    %c1_23 = arith.constant 1 : index
    %c0_24 = arith.constant 0 : index
    %19 = vector.load %arg10[%c1_22, %c1_23, %c0_24] : memref<2x34x4xf32, #tpu.memory_space<vmem>>, vector<1x32x4xf32>
    %20 = vector.shape_cast %19 : vector<1x32x4xf32> to vector<32x4xf32>
    %21 = tpu.concatenate %18, %20 in 0 : vector<32x4xf32>, vector<32x4xf32> -> vector<64x4xf32>
    %c0_25 = arith.constant 0 : index
    %c2 = arith.constant 2 : index
    %c0_26 = arith.constant 0 : index
    %22 = vector.load %arg10[%c0_25, %c2, %c0_26] : memref<2x34x4xf32, #tpu.memory_space<vmem>>, vector<1x32x4xf32>
    %23 = vector.shape_cast %22 : vector<1x32x4xf32> to vector<32x4xf32>
    %c1_27 = arith.constant 1 : index
    %c2_28 = arith.constant 2 : index
    %c0_29 = arith.constant 0 : index
    %24 = vector.load %arg10[%c1_27, %c2_28, %c0_29] : memref<2x34x4xf32, #tpu.memory_space<vmem>>, vector<1x32x4xf32>
    %25 = vector.shape_cast %24 : vector<1x32x4xf32> to vector<32x4xf32>
    %26 = tpu.concatenate %23, %25 in 0 : vector<32x4xf32>, vector<32x4xf32> -> vector<64x4xf32>
    %27 = tpu.concatenate %16, %21, %26 in 1 : vector<64x4xf32>, vector<64x4xf32>, vector<64x4xf32> -> vector<64x12xf32>
    %c0_30 = arith.constant 0 : index
    %c0_31 = arith.constant 0 : index
    %28 = vector.load %arg2[%c0_30, %c0_31] : memref<12x8xf32, #tpu.memory_space<vmem>>, vector<12x8xf32>
    %cst_32 = arith.constant dense<0.000000e+00> : vector<64x8xf32>
    %29 = tpu.matmul %27, %28, %cst_32 {dimension_numbers = #tpu.dot_dimension_numbers<[1], [0], [0], [1], [0, 0, 1, 1], [], []>} : vector<64x12xf32>, vector<12x8xf32>, vector<64x8xf32> -> vector<64x8xf32>
    %c0_33 = arith.constant 0 : index
    %c0_34 = arith.constant 0 : index
    %30 = vector.load %arg3[%c0_33, %c0_34] : memref<1x8xf32, #tpu.memory_space<vmem>>, vector<1x8xf32>
    %31 = vector.broadcast %30 : vector<1x8xf32> to vector<64x8xf32>
    %32 = arith.addf %29, %31 : vector<64x8xf32>
    %cst_35 = arith.constant 0.000000e+00 : f32
    %33 = vector.broadcast %cst_35 : f32 to vector<64x8xf32>
    %34 = arith.maximumf %32, %33 : vector<64x8xf32>
    %35 = tpu.iota {dimensions = array<i32: 0>} : vector<32x64xi32>
    %36 = tpu.iota {dimensions = array<i32: 1>} : vector<32x64xi32>
    %c2_i32 = arith.constant 2 : i32
    %37 = vector.broadcast %c2_i32 : i32 to vector<32x64xi32>
    %38 = arith.muli %37, %35 : vector<32x64xi32>
    %c0_i32 = arith.constant 0 : i32
    %39 = vector.broadcast %c0_i32 : i32 to vector<32x64xi32>
    %40 = arith.addi %38, %39 : vector<32x64xi32>
    %41 = arith.cmpi eq, %36, %40 : vector<32x64xi32>
    %cst_36 = arith.constant 1.000000e+00 : f32
    %cst_37 = arith.constant 0.000000e+00 : f32
    %42 = vector.broadcast %cst_36 : f32 to vector<32x64xf32>
    %43 = vector.broadcast %cst_37 : f32 to vector<32x64xf32>
    %44 = arith.select %41, %42, %43 : vector<32x64xi1>, vector<32x64xf32>
    %cst_38 = arith.constant dense<0.000000e+00> : vector<32x8xf32>
    %45 = tpu.matmul %44, %34, %cst_38 {dimension_numbers = #tpu.dot_dimension_numbers<[1], [0], [0], [1], [0, 0, 1, 1], [], []>} : vector<32x64xf32>, vector<64x8xf32>, vector<32x8xf32> -> vector<32x8xf32>
    %46 = tpu.iota {dimensions = array<i32: 0>} : vector<32x64xi32>
    %47 = tpu.iota {dimensions = array<i32: 1>} : vector<32x64xi32>
    %c2_i32_39 = arith.constant 2 : i32
    %48 = vector.broadcast %c2_i32_39 : i32 to vector<32x64xi32>
    %49 = arith.muli %48, %46 : vector<32x64xi32>
    %c1_i32 = arith.constant 1 : i32
    %50 = vector.broadcast %c1_i32 : i32 to vector<32x64xi32>
    %51 = arith.addi %49, %50 : vector<32x64xi32>
    %52 = arith.cmpi eq, %47, %51 : vector<32x64xi32>
    %cst_40 = arith.constant 1.000000e+00 : f32
    %cst_41 = arith.constant 0.000000e+00 : f32
    %53 = vector.broadcast %cst_40 : f32 to vector<32x64xf32>
    %54 = vector.broadcast %cst_41 : f32 to vector<32x64xf32>
    %55 = arith.select %52, %53, %54 : vector<32x64xi1>, vector<32x64xf32>
    %cst_42 = arith.constant dense<0.000000e+00> : vector<32x8xf32>
    %56 = tpu.matmul %55, %34, %cst_42 {dimension_numbers = #tpu.dot_dimension_numbers<[1], [0], [0], [1], [0, 0, 1, 1], [], []>} : vector<32x64xf32>, vector<64x8xf32>, vector<32x8xf32> -> vector<32x8xf32>
    %57 = arith.maximumf %45, %56 : vector<32x8xf32>
    %cst_43 = arith.constant 0.000000e+00 : f32
    %58 = vector.broadcast %cst_43 : f32 to vector<2x18x8xf32>
    %c0_44 = arith.constant 0 : index
    %c0_45 = arith.constant 0 : index
    %c0_46 = arith.constant 0 : index
    %59 = vector.load %arg11[%c0_44, %c0_45, %c0_46] : memref<2x18x8xf32, #tpu.memory_space<vmem>>, vector<2x18x8xf32>
    tpu.vector_store %arg11[%c0_44, %c0_45, %c0_46], %58 {strides = array<i32>} : memref<2x18x8xf32, #tpu.memory_space<vmem>>, vector<2x18x8xf32>,
    %60 = vector.extract_strided_slice %57 {offsets = [0, 0], sizes = [16, 8], strides = [1, 1]} : vector<32x8xf32> to vector<16x8xf32>
    %c0_47 = arith.constant 0 : index
    %c1_48 = arith.constant 1 : index
    %c0_49 = arith.constant 0 : index
    %61 = vector.load %arg11[%c0_47, %c1_48, %c0_49] : memref<2x18x8xf32, #tpu.memory_space<vmem>>, vector<1x16x8xf32>
    %62 = vector.shape_cast %61 : vector<1x16x8xf32> to vector<16x8xf32>
    %63 = vector.shape_cast %60 : vector<16x8xf32> to vector<1x16x8xf32>
    tpu.vector_store %arg11[%c0_47, %c1_48, %c0_49], %63 {strides = array<i32>} : memref<2x18x8xf32, #tpu.memory_space<vmem>>, vector<1x16x8xf32>,
    %64 = vector.extract_strided_slice %57 {offsets = [16, 0], sizes = [16, 8], strides = [1, 1]} : vector<32x8xf32> to vector<16x8xf32>
    %c1_50 = arith.constant 1 : index
    %c1_51 = arith.constant 1 : index
    %c0_52 = arith.constant 0 : index
    %65 = vector.load %arg11[%c1_50, %c1_51, %c0_52] : memref<2x18x8xf32, #tpu.memory_space<vmem>>, vector<1x16x8xf32>
    %66 = vector.shape_cast %65 : vector<1x16x8xf32> to vector<16x8xf32>
    %67 = vector.shape_cast %64 : vector<16x8xf32> to vector<1x16x8xf32>
    tpu.vector_store %arg11[%c1_50, %c1_51, %c0_52], %67 {strides = array<i32>} : memref<2x18x8xf32, #tpu.memory_space<vmem>>, vector<1x16x8xf32>,
    %c0_53 = arith.constant 0 : index
    %c0_54 = arith.constant 0 : index
    %c0_55 = arith.constant 0 : index
    %68 = vector.load %arg11[%c0_53, %c0_54, %c0_55] : memref<2x18x8xf32, #tpu.memory_space<vmem>>, vector<1x16x8xf32>
    %69 = vector.shape_cast %68 : vector<1x16x8xf32> to vector<16x8xf32>
    %c1_56 = arith.constant 1 : index
    %c0_57 = arith.constant 0 : index
    %c0_58 = arith.constant 0 : index
    %70 = vector.load %arg11[%c1_56, %c0_57, %c0_58] : memref<2x18x8xf32, #tpu.memory_space<vmem>>, vector<1x16x8xf32>
    %71 = vector.shape_cast %70 : vector<1x16x8xf32> to vector<16x8xf32>
    %72 = tpu.concatenate %69, %71 in 0 : vector<16x8xf32>, vector<16x8xf32> -> vector<32x8xf32>
    %c0_59 = arith.constant 0 : index
    %c1_60 = arith.constant 1 : index
    %c0_61 = arith.constant 0 : index
    %73 = vector.load %arg11[%c0_59, %c1_60, %c0_61] : memref<2x18x8xf32, #tpu.memory_space<vmem>>, vector<1x16x8xf32>
    %74 = vector.shape_cast %73 : vector<1x16x8xf32> to vector<16x8xf32>
    %c1_62 = arith.constant 1 : index
    %c1_63 = arith.constant 1 : index
    %c0_64 = arith.constant 0 : index
    %75 = vector.load %arg11[%c1_62, %c1_63, %c0_64] : memref<2x18x8xf32, #tpu.memory_space<vmem>>, vector<1x16x8xf32>
    %76 = vector.shape_cast %75 : vector<1x16x8xf32> to vector<16x8xf32>
    %77 = tpu.concatenate %74, %76 in 0 : vector<16x8xf32>, vector<16x8xf32> -> vector<32x8xf32>
    %c0_65 = arith.constant 0 : index
    %c2_66 = arith.constant 2 : index
    %c0_67 = arith.constant 0 : index
    %78 = vector.load %arg11[%c0_65, %c2_66, %c0_67] : memref<2x18x8xf32, #tpu.memory_space<vmem>>, vector<1x16x8xf32>
    %79 = vector.shape_cast %78 : vector<1x16x8xf32> to vector<16x8xf32>
    %c1_68 = arith.constant 1 : index
    %c2_69 = arith.constant 2 : index
    %c0_70 = arith.constant 0 : index
    %80 = vector.load %arg11[%c1_68, %c2_69, %c0_70] : memref<2x18x8xf32, #tpu.memory_space<vmem>>, vector<1x16x8xf32>
    %81 = vector.shape_cast %80 : vector<1x16x8xf32> to vector<16x8xf32>
    %82 = tpu.concatenate %79, %81 in 0 : vector<16x8xf32>, vector<16x8xf32> -> vector<32x8xf32>
    %83 = tpu.concatenate %72, %77, %82 in 1 : vector<32x8xf32>, vector<32x8xf32>, vector<32x8xf32> -> vector<32x24xf32>
    %c0_71 = arith.constant 0 : index
    %c0_72 = arith.constant 0 : index
    %84 = vector.load %arg4[%c0_71, %c0_72] : memref<24x16xf32, #tpu.memory_space<vmem>>, vector<24x16xf32>
    %cst_73 = arith.constant dense<0.000000e+00> : vector<32x16xf32>
    %85 = tpu.matmul %83, %84, %cst_73 {dimension_numbers = #tpu.dot_dimension_numbers<[1], [0], [0], [1], [0, 0, 1, 1], [], []>} : vector<32x24xf32>, vector<24x16xf32>, vector<32x16xf32> -> vector<32x16xf32>
    %c0_74 = arith.constant 0 : index
    %c0_75 = arith.constant 0 : index
    %86 = vector.load %arg5[%c0_74, %c0_75] : memref<1x16xf32, #tpu.memory_space<vmem>>, vector<1x16xf32>
    %87 = vector.broadcast %86 : vector<1x16xf32> to vector<32x16xf32>
    %88 = arith.addf %85, %87 : vector<32x16xf32>
    %cst_76 = arith.constant 0.000000e+00 : f32
    %89 = vector.broadcast %cst_76 : f32 to vector<32x16xf32>
    %90 = arith.maximumf %88, %89 : vector<32x16xf32>
    %91 = tpu.iota {dimensions = array<i32: 0>} : vector<16x32xi32>
    %92 = tpu.iota {dimensions = array<i32: 1>} : vector<16x32xi32>
    %c2_i32_77 = arith.constant 2 : i32
    %93 = vector.broadcast %c2_i32_77 : i32 to vector<16x32xi32>
    %94 = arith.muli %93, %91 : vector<16x32xi32>
    %c0_i32_78 = arith.constant 0 : i32
    %95 = vector.broadcast %c0_i32_78 : i32 to vector<16x32xi32>
    %96 = arith.addi %94, %95 : vector<16x32xi32>
    %97 = arith.cmpi eq, %92, %96 : vector<16x32xi32>
    %cst_79 = arith.constant 1.000000e+00 : f32
    %cst_80 = arith.constant 0.000000e+00 : f32
    %98 = vector.broadcast %cst_79 : f32 to vector<16x32xf32>
    %99 = vector.broadcast %cst_80 : f32 to vector<16x32xf32>
    %100 = arith.select %97, %98, %99 : vector<16x32xi1>, vector<16x32xf32>
    %cst_81 = arith.constant dense<0.000000e+00> : vector<16x16xf32>
    %101 = tpu.matmul %100, %90, %cst_81 {dimension_numbers = #tpu.dot_dimension_numbers<[1], [0], [0], [1], [0, 0, 1, 1], [], []>} : vector<16x32xf32>, vector<32x16xf32>, vector<16x16xf32> -> vector<16x16xf32>
    %102 = tpu.iota {dimensions = array<i32: 0>} : vector<16x32xi32>
    %103 = tpu.iota {dimensions = array<i32: 1>} : vector<16x32xi32>
    %c2_i32_82 = arith.constant 2 : i32
    %104 = vector.broadcast %c2_i32_82 : i32 to vector<16x32xi32>
    %105 = arith.muli %104, %102 : vector<16x32xi32>
    %c1_i32_83 = arith.constant 1 : i32
    %106 = vector.broadcast %c1_i32_83 : i32 to vector<16x32xi32>
    %107 = arith.addi %105, %106 : vector<16x32xi32>
    %108 = arith.cmpi eq, %103, %107 : vector<16x32xi32>
    %cst_84 = arith.constant 1.000000e+00 : f32
    %cst_85 = arith.constant 0.000000e+00 : f32
    %109 = vector.broadcast %cst_84 : f32 to vector<16x32xf32>
    %110 = vector.broadcast %cst_85 : f32 to vector<16x32xf32>
    %111 = arith.select %108, %109, %110 : vector<16x32xi1>, vector<16x32xf32>
    %cst_86 = arith.constant dense<0.000000e+00> : vector<16x16xf32>
    %112 = tpu.matmul %111, %90, %cst_86 {dimension_numbers = #tpu.dot_dimension_numbers<[1], [0], [0], [1], [0, 0, 1, 1], [], []>} : vector<16x32xf32>, vector<32x16xf32>, vector<16x16xf32> -> vector<16x16xf32>
    %113 = arith.maximumf %101, %112 : vector<16x16xf32>
    %114 = tpu.iota {dimensions = array<i32: 0>} : vector<16x128xi32>
    %115 = tpu.iota {dimensions = array<i32: 1>} : vector<16x128xi32>
    %c8_i32 = arith.constant 8 : i32
    %116 = vector.broadcast %c8_i32 : i32 to vector<16x128xi32>
    %117 = arith.muli %114, %116 : vector<16x128xi32>
    %118 = arith.cmpi sge, %115, %117 : vector<16x128xi32>
    %c1_i32_87 = arith.constant 1 : i32
    %119 = vector.broadcast %c1_i32_87 : i32 to vector<16x128xi32>
    %120 = arith.addi %114, %119 : vector<16x128xi32>
    %c8_i32_88 = arith.constant 8 : i32
    %121 = vector.broadcast %c8_i32_88 : i32 to vector<16x128xi32>
    %122 = arith.muli %120, %121 : vector<16x128xi32>
    %123 = arith.cmpi slt, %115, %122 : vector<16x128xi32>
    %124 = arith.andi %118, %123 : vector<16x128xi1>
    %cst_89 = arith.constant 1.000000e+00 : f32
    %cst_90 = arith.constant 0.000000e+00 : f32
    %125 = vector.broadcast %cst_89 : f32 to vector<16x128xf32>
    %126 = vector.broadcast %cst_90 : f32 to vector<16x128xf32>
    %127 = arith.select %124, %125, %126 : vector<16x128xi1>, vector<16x128xf32>
    %128 = tpu.iota {dimensions = array<i32: 0>} : vector<16x128xi32>
    %129 = tpu.iota {dimensions = array<i32: 1>} : vector<16x128xi32>
    %130 = arith.subi %129, %128 : vector<16x128xi32>
    %c7_i32 = arith.constant 7 : i32
    %131 = vector.broadcast %c7_i32 : i32 to vector<16x128xi32>
    %132 = arith.andi %130, %131 : vector<16x128xi32>
    %c0_i32_91 = arith.constant 0 : i32
    %133 = vector.broadcast %c0_i32_91 : i32 to vector<16x128xi32>
    %134 = arith.cmpi eq, %132, %133 : vector<16x128xi32>
    %cst_92 = arith.constant 1.000000e+00 : f32
    %cst_93 = arith.constant 0.000000e+00 : f32
    %135 = vector.broadcast %cst_92 : f32 to vector<16x128xf32>
    %136 = vector.broadcast %cst_93 : f32 to vector<16x128xf32>
    %137 = arith.select %134, %135, %136 : vector<16x128xi1>, vector<16x128xf32>
    %138 = tpu.iota {dimensions = array<i32: 0>} : vector<2x16xi32>
    %139 = tpu.iota {dimensions = array<i32: 1>} : vector<2x16xi32>
    %c8_i32_94 = arith.constant 8 : i32
    %140 = vector.broadcast %c8_i32_94 : i32 to vector<2x16xi32>
    %141 = arith.muli %138, %140 : vector<2x16xi32>
    %142 = arith.cmpi sge, %139, %141 : vector<2x16xi32>
    %c1_i32_95 = arith.constant 1 : i32
    %143 = vector.broadcast %c1_i32_95 : i32 to vector<2x16xi32>
    %144 = arith.addi %138, %143 : vector<2x16xi32>
    %c8_i32_96 = arith.constant 8 : i32
    %145 = vector.broadcast %c8_i32_96 : i32 to vector<2x16xi32>
    %146 = arith.muli %144, %145 : vector<2x16xi32>
    %147 = arith.cmpi slt, %139, %146 : vector<2x16xi32>
    %148 = arith.andi %142, %147 : vector<2x16xi1>
    %cst_97 = arith.constant 1.000000e+00 : f32
    %cst_98 = arith.constant 0.000000e+00 : f32
    %149 = vector.broadcast %cst_97 : f32 to vector<2x16xf32>
    %150 = vector.broadcast %cst_98 : f32 to vector<2x16xf32>
    %151 = arith.select %148, %149, %150 : vector<2x16xi1>, vector<2x16xf32>
    %cst_99 = arith.constant dense<0.000000e+00> : vector<16x128xf32>
    %152 = tpu.matmul %113, %127, %cst_99 {dimension_numbers = #tpu.dot_dimension_numbers<[1], [0], [0], [1], [0, 0, 1, 1], [], []>} : vector<16x16xf32>, vector<16x128xf32>, vector<16x128xf32> -> vector<16x128xf32>
    %153 = arith.mulf %152, %137 : vector<16x128xf32>
    %cst_100 = arith.constant dense<0.000000e+00> : vector<2x128xf32>
    %154 = tpu.matmul %151, %153, %cst_100 {dimension_numbers = #tpu.dot_dimension_numbers<[1], [0], [0], [1], [0, 0, 1, 1], [], []>} : vector<2x16xf32>, vector<16x128xf32>, vector<2x128xf32> -> vector<2x128xf32>
    %c0_101 = arith.constant 0 : index
    %c0_102 = arith.constant 0 : index
    %155 = vector.load %arg9[%c0_101, %c0_102] : memref<2x128xf32, #tpu.memory_space<vmem>>, vector<2x128xf32>
    tpu.vector_store %arg9[%c0_101, %c0_102], %154 {strides = array<i32>} : memref<2x128xf32, #tpu.memory_space<vmem>>, vector<2x128xf32>,
    %c0_103 = arith.constant 0 : index
    %c0_104 = arith.constant 0 : index
    %156 = vector.load %arg6[%c0_103, %c0_104] : memref<1x128xf32, #tpu.memory_space<vmem>>, vector<1x128xf32>
    %157 = vector.broadcast %156 : vector<1x128xf32> to vector<2x128xf32>
    %158 = arith.mulf %154, %157 : vector<2x128xf32>
    %cst_105 = arith.constant dense<0.000000e+00> : vector<2xf32>
    %159 = vector.multi_reduction <add>, %158, %cst_105 [1] : vector<2x128xf32> to vector<2xf32>
    %160 = vector.shape_cast %159 : vector<2xf32> to vector<2x1xf32>
    %c0_106 = arith.constant 0 : index
    %c0_107 = arith.constant 0 : index
    %161 = vector.load %arg7[%c0_106, %c0_107] : memref<1x1xf32, #tpu.memory_space<vmem>>, vector<1x1xf32>
    %162 = vector.broadcast %161 : vector<1x1xf32> to vector<2x1xf32>
    %163 = arith.addf %160, %162 : vector<2x1xf32>
    %c0_108 = arith.constant 0 : index
    %c0_109 = arith.constant 0 : index
    %164 = vector.load %arg8[%c0_108, %c0_109] : memref<2x1xf32, #tpu.memory_space<vmem>>, vector<2x1xf32>
    tpu.vector_store %arg8[%c0_108, %c0_109], %163 {strides = array<i32>} : memref<2x1xf32, #tpu.memory_space<vmem>>, vector<2x1xf32>,
    return
  }
  func.func @transform_0(%arg0: i32) -> (i32, i32, i32) {
    %c0_i32 = arith.constant 0 : i32
    %c0_i32_0 = arith.constant 0 : i32
    %c0_i32_1 = arith.constant 0 : i32
    %c0_i32_2 = arith.constant 0 : i32
    return %c0_i32, %c0_i32_0, %c0_i32_1 : i32, i32, i32
  }
  func.func @transform_1(%arg0: i32) -> (i32, i32) {
    %c0_i32 = arith.constant 0 : i32
    %c0_i32_0 = arith.constant 0 : i32
    %c0_i32_1 = arith.constant 0 : i32
    return %c0_i32, %c0_i32_0 : i32, i32
  }
  func.func @transform_2(%arg0: i32) -> (i32, i32) {
    %c0_i32 = arith.constant 0 : i32
    %c0_i32_0 = arith.constant 0 : i32
    %c0_i32_1 = arith.constant 0 : i32
    return %c0_i32, %c0_i32_0 : i32, i32
  }
  func.func @transform_3(%arg0: i32) -> (i32, i32) {
    %c0_i32 = arith.constant 0 : i32
    %c0_i32_0 = arith.constant 0 : i32
    %c0_i32_1 = arith.constant 0 : i32
    return %c0_i32, %c0_i32_0 : i32, i32
  }
  func.func @transform_4(%arg0: i32) -> (i32, i32) {
    %c0_i32 = arith.constant 0 : i32
    %c0_i32_0 = arith.constant 0 : i32
    %c0_i32_1 = arith.constant 0 : i32
    return %c0_i32, %c0_i32_0 : i32, i32
  }
  func.func @transform_5(%arg0: i32) -> (i32, i32) {
    %c0_i32 = arith.constant 0 : i32
    %c0_i32_0 = arith.constant 0 : i32
    %c0_i32_1 = arith.constant 0 : i32
    return %c0_i32, %c0_i32_0 : i32, i32
  }
  func.func @transform_6(%arg0: i32) -> (i32, i32) {
    %c0_i32 = arith.constant 0 : i32
    %c0_i32_0 = arith.constant 0 : i32
    %c0_i32_1 = arith.constant 0 : i32
    return %c0_i32, %c0_i32_0 : i32, i32
  }
  func.func @transform_7(%arg0: i32) -> (i32, i32) {
    %c0_i32 = arith.constant 0 : i32
    %c0_i32_0 = arith.constant 0 : i32
    %c0_i32_1 = arith.constant 0 : i32
    return %c0_i32, %c0_i32_0 : i32, i32
  }
  func.func @transform_8(%arg0: i32) -> (i32, i32) {
    %c0_i32 = arith.constant 0 : i32
    %c0_i32_0 = arith.constant 0 : i32
    %c0_i32_1 = arith.constant 0 : i32
    return %c0_i32, %c0_i32_0 : i32, i32
  }
}

</mosaic_0001>

<bundles_post_ra>
// kernel: forward.1
= control target key start
LH: loop header
LB: loop body
LE: loop exit
PB: predicated region body
PF: predicated region fallthrough
CT: control target
= control target key end

     0   :  { %s1713_s0 = inlined_call_operand.vmem [shape: f32[2,32,4], index: 0, kind: input, shape index: {}]   ;;  %s1714_s1 = inlined_call_operand.vmem [shape: f32[12,8], index: 1, kind: input, shape index: {}]   ;;  %s1715_s2 = inlined_call_operand.vmem [shape: f32[1,8], index: 2, kind: input, shape index: {}]   ;;  %s1716_s3 = inlined_call_operand.vmem [shape: f32[24,16], index: 3, kind: input, shape index: {}]   ;;  %s1717_s4 = inlined_call_operand.vmem [shape: f32[1,16], index: 4, kind: input, shape index: {}]   ;;  %s1718_s5 = inlined_call_operand.vmem [shape: f32[1,128], index: 5, kind: input, shape index: {}]   ;;  %s1719_s6 = inlined_call_operand.<no memory space> [shape: f32[1,1], index: 6, kind: input, shape index: {}]   ;;  %s1720_s7 = inlined_call_operand.vmem [shape: f32[2,1], index: 7, kind: output, shape index: {0}]   ;;  %s1721_s8 = inlined_call_operand.hbm [shape: f32[2,128], index: 8, kind: output, shape index: {1}]  }
   0x1   :  { %v14_v0 = vstv %s1719_s6 }
   0x2   :  { %15 = vst [vmem:[#allocation4] sm:$0x1] %v14_v0 }
   0x3   :  { %vm31_vm0 = vcmask 31744   ;;  %v43_v1 = vld [vmem:[%s1713_s0] sm:$0xff]  ;;  %v44_v2 = vld [vmem:[%s1713_s0 + $0x8] sm:$0xff]  ;;  %v1408_v3 = vmov 0.0   ;;  %v45_v4 = vld [vmem:[%s1713_s0 + $0x10] sm:$0xff]  ;;  %vm36_vm1 = vcmask 25600  }
   0x4   :  { %32 = vst.msk [vmem:[#allocation2] sm:$0xff] %vm31_vm0, %v1408_v3  ;;  %33 = vst.msk [vmem:[#allocation2 + $0x8] sm:$0xff] %vm31_vm0, %v1408_v3  ;;  %v46_v5 = vld [vmem:[%s1713_s0 + $0x18] sm:$0xff]  ;;  %v1105_v6 = vld [vmem:[%s1713_s0 + $0x28] sm:$0xff]  ;;  %vm200_vm2 = vcmask 1043456   ;;  %vm157_vm3 = vcmask 64512  }
   0x5   :  { %34 = vst.msk [vmem:[#allocation2 + $0x10] sm:$0xff] %vm31_vm0, %v1408_v3  ;;  %35 = vst.msk [vmem:[#allocation2 + $0x18] sm:$0xff] %vm31_vm0, %v1408_v3  ;;  %v1104_v7 = vld [vmem:[%s1713_s0 + $0x20] sm:$0xff]  ;;  %v1106_v8 = vld [vmem:[%s1713_s0 + $0x30] sm:$0xff]  ;;  %vm1409_vm4 = vmmov 1  }
   0x6   :  { %38 = vst.msk [vmem:[#allocation2 + $0x28] sm:$0xff] %vm31_vm0, %v1408_v3  ;;  %39 = vst.msk [vmem:[#allocation2 + $0x30] sm:$0xff] %vm31_vm0, %v1408_v3  ;;  %v1107_v9 = vld [vmem:[%s1713_s0 + $0x38] sm:$0xff]  ;;  %v166_v10 = vld [vmem:[%s1714_s1] sm:$0xff] }
   0x7   :  { %40 = vst.msk [vmem:[#allocation2 + $0x38] sm:$0xff] %vm31_vm0, %v1408_v3  ;;  %41 = vst.msk [vmem:[#allocation2 + $0x40] sm:$0xff] %vm31_vm0, %v1408_v3  ;;  %v167_v11 = vld [vmem:[%s1714_s1 + $0x8] sm:$0xf] }
   0x8   :  { %47 = vst.msk [vmem:[#allocation2 + $0x1] sm:$0xff] %vm31_vm0, %v43_v1  ;;  %48 = vst.msk [vmem:[#allocation2 + $0x9] sm:$0xff] %vm31_vm0, %v44_v2  ;;  %v1310_v12 = vpack.c.bf16 %v167_v11, %v166_v10 }
   0x9   :  { %49 = vst.msk [vmem:[#allocation2 + $0x11] sm:$0xff] %vm31_vm0, %v45_v4  ;;  %58 = vst.msk [vmem:[#allocation2 + $0x31] sm:$0xff] %vm31_vm0, %v1105_v6 }
   0xa   :  { %37 = vst.msk [vmem:[#allocation2 + $0x20] sm:$0x3] %vm36_vm1, %v1408_v3  ;;  %42 = vst.msk [vmem:[#allocation2 + $0x48] sm:$0x3] %vm36_vm1, %v1408_v3 }
   0xb   :  { %50 = vst.msk [vmem:[#allocation2 + $0x19] sm:$0xff] %vm31_vm0, %v46_v5  ;;  %57 = vst.msk [vmem:[#allocation2 + $0x29] sm:$0xff] %vm31_vm0, %v1104_v7 }
   0xc   :  { %59 = vst.msk [vmem:[#allocation2 + $0x39] sm:$0xff] %vm31_vm0, %v1106_v8  ;;  %60 = vst.msk [vmem:[#allocation2 + $0x41] sm:$0xff] %vm31_vm0, %v1107_v9 }
   0xd   :  { %vm1311_vm5 = vmpackc.low %vm200_vm2, %vm1409_vm4  ;;  %547 = vst.msk [vmem:[#allocation3] sm:$0xff] %vm157_vm3, %v1408_v3 }
   0xe   :  { %548 = vst.msk [vmem:[#allocation3 + $0x8] sm:$0xff] %vm157_vm3, %v1408_v3  ;;  %551 = vst.msk [vmem:[#allocation3 + $0x18] sm:$0xff] %vm157_vm3, %v1408_v3 }
   0xf   :  { %552 = vst.msk [vmem:[#allocation3 + $0x20] sm:$0xff] %vm157_vm3, %v1408_v3 }
  0x10   :  { %16 = vsyncpa [#allocation6], 0  ;;  %1312 = vmatprep.subr.msk.bf16.mxu0 %vm1311_vm5, %v1310_v12  ;;  %v77_v13 = vld [vmem:[#allocation2 + $0x2] sm:$0xff]  ;;  %s1410_s0 = smov 8   ;;  %s1411_s1 = smov 4   ;;  %v78_v15 = vld [vmem:[#allocation2 + $0xa] sm:$0xff]  ;;  %v317_v6 = vlaneseq }
  0x11   :  { %1315 = vmatpush3.bf16.msk.msra.mxu0 %vm1311_vm5, %v1310_v12  ;;  %v69_v14 = vld [vmem:[#allocation2 + $0x1] sm:$0xff]  ;;  %125 = vrot.lane.b32.xlu1 %v77_v13, %s1410_s0  ;;  %v70_v16 = vld [vmem:[#allocation2 + $0x9] sm:$0xff]  ;;  %v71_v18 = vld [vmem:[#allocation2 + $0x11] sm:$0xff]  ;;  %vm175_vm6 = vcmask 97280   ;;  %vm336_vm8 = vcmask 523264   ;;  %vm607_vm1 = vcmask 130048  }
  0x12   :  { %93 = vrot.lane.b32.xlu0 %v69_v14, %s1411_s1  ;;  %v72_v17 = vld [vmem:[#allocation2 + $0x19] sm:$0xff]  ;;  %v74_v21 = vld [vmem:[#allocation2 + $0x31] sm:$0xff]  ;;  %v73_v22 = vld [vmem:[#allocation2 + $0x29] sm:$0xff]  ;;  %v1562_v7 = vshrl.u32 %v317_v6, 7  ;;  %v1565_v9 = vand.u32 127, %v317_v6  ;;  %vm622_vm2 = vcmask 195584  }
  0x13   :  { %v80_v19 = vld [vmem:[#allocation2 + $0x1a] sm:$0xff]  ;;  %v79_v20 = vld [vmem:[#allocation2 + $0x12] sm:$0xff]  ;;  %v81_v24 = vld [vmem:[#allocation2 + $0x2a] sm:$0xff]  ;;  %vm724_vm4 = vcmask 261120   ;;  %s1416_s13 = smov [#allocation5]  }
  0x14   :  { %v82_v23 = vld [vmem:[#allocation2 + $0x32] sm:$0xff]  ;;  %v76_v25 = vld [vmem:[#allocation2 + $0x41] sm:$0xff]  ;;  %v324_v8 = vmul.u32 2, %v1562_v7  ;;  %v1108_v13 = vld [vmem:[%s1715_s2] ss:$0 sm:$0xff]  ;;  %s1094_s14 = sshll.u32 %s1416_s13, 4  ;;  %s1095_s14 = int_to_ptr.vmem [resolvable:$true] %s1094_s14 }
  0x15   :  { %127 = vrot.lane.b32.xlu1 %v78_v15, %s1410_s0  ;;  %v75_v26 = vld [vmem:[#allocation2 + $0x39] sm:$0xff]  ;;  %v84_v27 = vld [vmem:[#allocation2 + $0x42] sm:$0xff]  ;;  %v63_v42 = vld [vmem:[#allocation2 + $0x10] sm:$0xff]  ;;  %s1384_s15 = scalar_lea.vmem %s1095_s14, 32  ;;  %p1389_p1 = scmp.lt.s32.totalorder %s1095_s14, %s1095_s14 }
  0x16   :  { %95 = vrot.lane.b32.xlu0 %v70_v16, %s1411_s1  ;;  %v83_v28 = vld [vmem:[#allocation2 + $0x3a] sm:$0xff]  ;;  %v62_v34 = vld [vmem:[#allocation2 + $0x8] sm:$0xff]  ;;  %v66_v51 = vld [vmem:[#allocation2 + $0x30] sm:$0xff]  ;;  %v434_v10 = vadd.s32 1, %v324_v8  ;;  %vm328_vm7 = vcmp.eq.s32.totalorder %v1565_v9, %v324_v8  ;;  %p1385_p0 = scmp.ne.s32.totalorder %s1095_s14, %s1384_s15  ;;  %p1390_p2 = scmp.lt.s32.totalorder %s1384_s15, %s1384_s15 }
  0x17   :  { %v61_v29 = vld [vmem:[#allocation2] sm:$0xff]  ;;  %v64_v41 = vld [vmem:[#allocation2 + $0x18] sm:$0xff]  ;;  %v65_v52 = vld [vmem:[#allocation2 + $0x28] sm:$0xff]  ;;  %v1570_v11 = vsel %vm328_vm7, 1.0, %v1408_v3 }
  0x18   :  { %v68_v61 = vld [vmem:[#allocation2 + $0x40] sm:$0xff]  ;;  %v67_v62 = vld [vmem:[#allocation2 + $0x38] sm:$0xff]  ;;  %vm438_vm9 = vcmp.eq.s32.totalorder %v1565_v9, %v434_v10  ;;  %1234 = vmatprep.mubr.msk.f32.mxu1 %vm336_vm8, %v1570_v11  ;;  %p1391_p3 = por %p1390_p2, %p1389_p1 }
  0x19   :  { %99 = vrot.lane.b32.xlu1 %v72_v17, %s1411_s1  ;;  %v1573_v12 = vsel %vm438_vm9, 1.0, %v1408_v3 }
  0x1a   :  { %97 = vrot.lane.b32.xlu0 %v71_v18, %s1411_s1  ;;  %p1392_p4 = pnand %p1391_p3, %p1385_p0 }
  0x1d   :  { %131 = vrot.lane.b32.xlu1 %v80_v19, %s1410_s0 }
  0x1e   :  { %129 = vrot.lane.b32.xlu0 %v79_v20, %s1410_s0 }
  0x21   :  { %103 = vrot.lane.b32.xlu1 %v74_v21, %s1411_s1 }
  0x22   :  { %101 = vrot.lane.b32.xlu0 %v73_v22, %s1411_s1 }
  0x25   :  { %135 = vrot.lane.b32.xlu1 %v82_v23, %s1410_s0 }
  0x26   :  { %133 = vrot.lane.b32.xlu0 %v81_v24, %s1410_s0 }
  0x29   :  { %107 = vrot.lane.b32.xlu1 %v76_v25, %s1411_s1 }
  0x2a   :  { %105 = vrot.lane.b32.xlu0 %v75_v26, %s1411_s1 }
  0x2d   :  { %139 = vrot.lane.b32.xlu1 %v84_v27, %s1410_s0 }
  0x2e   :  { %137 = vrot.lane.b32.xlu0 %v83_v28, %s1410_s0 }
  0x83   :  { %v126_v30 = vpop.permute.xlu1 %125 }
  0x84   :  { %v94_v31 = vpop.permute.xlu0 %93 }
  0x85   :  { %v149_v32 = vsel %vm31_vm0, %v61_v29, %v94_v31 }
  0x86   :  { %v158_v33 = vsel %vm157_vm3, %v149_v32, %v126_v30  ;;  %v1583_v32 = vadd.s32 8, %v1562_v7 }
  0x87   :  { %1206 = vmatprep.mubr.msk.f32.mxu0 %vm175_vm6, %v158_v33  ;;  %v128_v35 = vpop.permute.xlu1 %127 }
  0x88   :  { %v96_v36 = vpop.permute.xlu0 %95 }
  0x89   :  { %v150_v37 = vsel %vm31_vm0, %v62_v34, %v96_v36  ;;  %v320_v34 = vadd.s32 16, %v1562_v7 }
  0x8a   :  { %v159_v38 = vsel %vm157_vm3, %v150_v37, %v128_v35  ;;  %v325_v37 = vmul.u32 2, %v1583_v32 }
  0x8b   :  { %1207 = vmatmul.mubr.msk.f32.vlgmr.msra.gmra.mrb[0].mxu0 %vm175_vm6, %v159_v38  ;;  %v100_v39 = vpop.permute.xlu1 %99  ;;  %v321_v38 = vadd.s32 24, %v1562_v7 }
  0x8c   :  { %v98_v40 = vpop.permute.xlu0 %97  ;;  %v152_v43 = vsel %vm31_vm0, %v64_v41, %v100_v39  ;;  %v326_v39 = vmul.u32 2, %v320_v34  ;;  %vm329_vm10 = vcmp.eq.s32.totalorder %v1565_v9, %v325_v37 }
  0x8d   :  { %v151_v44 = vsel %vm31_vm0, %v63_v42, %v98_v40 }
  0x8e   :  { %vm330_vm12 = vcmp.eq.s32.totalorder %v1565_v9, %v326_v39 }
  0x8f   :  { %v132_v45 = vpop.permute.xlu1 %131 }
  0x90   :  { %v130_v46 = vpop.permute.xlu0 %129  ;;  %v161_v47 = vsel %vm157_vm3, %v152_v43, %v132_v45  ;;  %v327_v45 = vmul.u32 2, %v321_v38 }
  0x91   :  { %v160_v48 = vsel %vm157_vm3, %v151_v44, %v130_v46  ;;  %v435_v44 = vadd.s32 1, %v325_v37 }
  0x92   :  { %1209 = vmatprep.mubr.msk.f32.mxu0 %vm175_vm6, %v160_v48  ;;  %vm331_vm14 = vcmp.eq.s32.totalorder %v1565_v9, %v327_v45 }
  0x93   :  { %1210 = vmatmul.mubr.msk.f32.gmra.mrb[2].mxu0 %vm175_vm6, %v161_v47  ;;  %v104_v49 = vpop.permute.xlu1 %103  ;;  %v436_v47 = vadd.s32 1, %v326_v39  ;;  %vm439_vm11 = vcmp.eq.s32.totalorder %v1565_v9, %v435_v44 }
  0x94   :  { %v102_v50 = vpop.permute.xlu0 %101  ;;  %v154_v53 = vsel %vm31_vm0, %v66_v51, %v104_v49  ;;  %v1593_v51 = vsel %vm329_vm10, 1.0, %v1408_v3 }
  0x95   :  { %v153_v54 = vsel %vm31_vm0, %v65_v52, %v102_v50  ;;  %v437_v50 = vadd.s32 1, %v327_v45  ;;  %vm440_vm13 = vcmp.eq.s32.totalorder %v1565_v9, %v436_v47  ;;  %v1596_v52 = vsel %vm439_vm11, 1.0, %v1408_v3 }
  0x96   :  { %vm1415_vm11 = vmmov 0  }
  0x97   :  { %v136_v55 = vpop.permute.xlu1 %135  ;;  %vm441_vm15 = vcmp.eq.s32.totalorder %v1565_v9, %v437_v50 }
  0x98   :  { %v134_v56 = vpop.permute.xlu0 %133  ;;  %v163_v57 = vsel %vm157_vm3, %v154_v53, %v136_v55  ;;  %v334_v53 = vsel %vm330_vm12, 1.0, %v1408_v3  ;;  %v335_v55 = vsel %vm331_vm14, 1.0, %v1408_v3  ;;  %vm1072_vm14 = vcmask 1041408  }
  0x99   :  { %v162_v58 = vsel %vm157_vm3, %v153_v54, %v134_v56  ;;  %v444_v54 = vsel %vm440_vm13, 1.0, %v1408_v3  ;;  %v445_v56 = vsel %vm441_vm15, 1.0, %v1408_v3 }
  0x9a   :  { %1212 = vmatprep.mubr.msk.f32.mxu0 %vm175_vm6, %v162_v58  ;;  %v613_v58 = vld [vmem:[%s1716_s3 + $0x8] sm:$0xff] }
  0x9b   :  { %1213 = vmatmul.mubr.msk.f32.gmra.mrb[4].mxu0 %vm175_vm6, %v163_v57  ;;  %v108_v59 = vpop.permute.xlu1 %107  ;;  %v612_v57 = vld [vmem:[%s1716_s3] sm:$0xff] }
  0x9c   :  { %v106_v60 = vpop.permute.xlu0 %105  ;;  %v156_v63 = vsel %vm31_vm0, %v68_v61, %v108_v59  ;;  %v1348_v59 = vpack.c.bf16 %v613_v58, %v612_v57  ;;  %v889_v58 = vadd.s32 1, %v1562_v7 }
  0x9d   :  { %v155_v0 = vsel %vm31_vm0, %v67_v62, %v106_v60  ;;  %vm549_vm0 = vcmask 58368  }
  0x9e   :  { %550 = vst.msk [vmem:[#allocation3 + $0x10] sm:$0x3] %vm549_vm0, %v1408_v3  ;;  %553 = vst.msk [vmem:[#allocation3 + $0x28] sm:$0x3] %vm549_vm0, %v1408_v3 }
  0x9f   :  { %v140_v1 = vpop.permute.xlu1 %139 }
  0xa0   :  { %v138_v2 = vpop.permute.xlu0 %137  ;;  %v165_v4 = vsel %vm157_vm3, %v156_v63, %v140_v1 }
  0xa1   :  { %v164_v5 = vsel %vm157_vm3, %v155_v0, %v138_v2  ;;  %v614_v2 = vld [vmem:[%s1716_s3 + $0x10] sm:$0xff]  ;;  %s1412_s3 = smov 16  }
  0xa2   :  { %1215 = vmatprep.mubr.msk.f32.mxu0 %vm175_vm6, %v164_v5 }
  0xa3   :  { %1216 = vmatmul.mubr.msk.f32.gmra.mrb[6].mxu0 %vm175_vm6, %v165_v4 }
  0xa4   :  { %1256 = vmatprep.mubr.msk.f32.mxu0 %vm336_vm8, %v1573_v12 }
 0x15e   :  { %v1208_v14 = vpop.f32.mrb[0].mxu0 }
 0x15f   :  { %v276_v15 = vadd.f32 %v1208_v14, %v1108_v13  ;;  %v270_v16 = vpop.f32.mrb[1].mxu0 }
 0x160   :  { %v271_v17 = vadd.f32 %v1108_v13, %v270_v16 }
 0x161   :  { %v310_v18 = vmax.f32 %v276_v15, 0.0 }
 0x162   :  { %v309_v19 = vmax.f32 %v271_v17, 0.0 }
 0x164   :  { %v1316_v20 = vpack.c.bf16 %v310_v18, %v309_v19 }
 0x166   :  { %v1211_v21 = vpop.f32.mrb[2].mxu0  ;;  %1317 = vmatprep.subr.bf16.mxu1 %v1316_v20  ;;  %1333 = vmatprep.subr.bf16.mxu0 %v1316_v20 }
 0x167   :  { %v286_v22 = vadd.f32 %v1211_v21, %v1108_v13  ;;  %v280_v23 = vpop.f32.mrb[3].mxu0  ;;  %1319 = vmatpush3.bf16.msra.mxu1 %v1316_v20  ;;  %1335 = vmatpush3.bf16.msra.mxu0 %v1316_v20 }
 0x168   :  { %v281_v24 = vadd.f32 %v1108_v13, %v280_v23 }
 0x169   :  { %v312_v25 = vmax.f32 %v286_v22, 0.0 }
 0x16a   :  { %v311_v26 = vmax.f32 %v281_v24, 0.0 }
 0x16c   :  { %v1320_v27 = vpack.c.bf16 %v312_v25, %v311_v26 }
 0x16e   :  { %v1214_v28 = vpop.f32.mrb[4].mxu0  ;;  %1321 = vmatprep.subr.bf16.mxu1 %v1320_v27  ;;  %1337 = vmatprep.subr.bf16.mxu0 %v1320_v27 }
 0x16f   :  { %v296_v29 = vadd.f32 %v1214_v28, %v1108_v13  ;;  %v290_v30 = vpop.f32.mrb[5].mxu0  ;;  %1323 = vmatpush3.bf16.msra.mxu1 %v1320_v27  ;;  %1339 = vmatpush3.bf16.msra.mxu0 %v1320_v27 }
 0x170   :  { %v291_v31 = vadd.f32 %v1108_v13, %v290_v30 }
 0x171   :  { %v314_v33 = vmax.f32 %v296_v29, 0.0 }
 0x172   :  { %v313_v35 = vmax.f32 %v291_v31, 0.0 }
 0x174   :  { %v1324_v36 = vpack.c.bf16 %v314_v33, %v313_v35 }
 0x176   :  { %v1217_v40 = vpop.f32.mrb[6].mxu0  ;;  %1325 = vmatprep.subr.bf16.mxu1 %v1324_v36  ;;  %1341 = vmatprep.subr.bf16.mxu0 %v1324_v36 }
 0x177   :  { %v306_v41 = vadd.f32 %v1217_v40, %v1108_v13  ;;  %v300_v42 = vpop.f32.mrb[7].mxu0  ;;  %1327 = vmatpush3.bf16.msra.mxu1 %v1324_v36  ;;  %1343 = vmatpush3.bf16.msra.mxu0 %v1324_v36 }
 0x178   :  { %v301_v43 = vadd.f32 %v1108_v13, %v300_v42 }
 0x179   :  { %v316_v46 = vmax.f32 %v306_v41, 0.0 }
 0x17a   :  { %v315_v48 = vmax.f32 %v301_v43, 0.0  ;;  %v1126_v43 = vld [vmem:[%s1717_s4] ss:$0 sm:$0xff] }
 0x17c   :  { %v1328_v49 = vpack.c.bf16 %v316_v46, %v315_v48 }
 0x17e   :  { %1329 = vmatprep.subr.bf16.mxu1 %v1328_v49  ;;  %1345 = vmatprep.subr.bf16.mxu0 %v1328_v49 }
 0x17f   :  { %1331 = vmatpush3.bf16.msra.mxu1 %v1328_v49  ;;  %1347 = vmatpush3.bf16.msra.mxu0 %v1328_v49 }
 0x180   :  { %1349 = vmatprep.subr.bf16.mxu1 %v1348_v59 }
 0x182   :  { %1235 = vmatmul.mubr.msk.f32.vlgmr.msra.gmra.mrb[0].mxu1 %vm336_vm8, %v1593_v51  ;;  %1257 = vmatmul.mubr.msk.f32.vlgmr.msra.gmra.mrb[8].mxu0 %vm336_vm8, %v1596_v52 }
 0x183   :  { %1237 = vmatprep.mubr.msk.f32.mxu1 %vm336_vm8, %v334_v53  ;;  %1259 = vmatprep.mubr.msk.f32.mxu0 %vm336_vm8, %v444_v54 }
 0x184   :  { %1351 = vmatpush3.bf16.msra.mxu1 %v1348_v59  ;;  %v890_v59 = vadd.s32 1, %v1583_v32 }
 0x185   :  { %1266 = vmatprep.subr.mxu1 %v614_v2 }
 0x186   :  { %1238 = vmatmul.mubr.msk.f32.gmra.mrb[2].mxu1 %vm336_vm8, %v335_v55  ;;  %1260 = vmatmul.mubr.msk.f32.gmra.mrb[10].mxu0 %vm336_vm8, %v445_v56 }
 0x187   :  { %1282 = vmatprep.mubr.msk.f32.mxu0 %vm724_vm4, %v1570_v11 }
 0x188   :  { %1267 = vmatpush3.msra.mxu1 %v614_v2 }
 0x255   :  { %v1236_v60 = vpop.f32.mrb[0].mxu1  ;;  %v1258_v61 = vpop.f32.mrb[8].mxu0 }
 0x256   :  { %v544_v62 = vmax.f32 %v1236_v60, %v1258_v61  ;;  %v415_v63 = vpop.f32.mrb[1].mxu1  ;;  %v524_v0 = vpop.f32.mrb[9].mxu0  ;;  %v885_v60 = vmul.u32 8, %v1562_v7  ;;  %v886_v61 = vmul.u32 8, %v1583_v32 }
 0x257   :  { %v543_v1 = vmax.f32 %v415_v63, %v524_v0  ;;  %v892_v63 = vmul.u32 8, %v890_v59 }
 0x258   :  { %555 = vst.msk [vmem:[#allocation3 + $0x9] sm:$0xff] %vm157_vm3, %v544_v62  ;;  %v891_v62 = vmul.u32 8, %v889_v58  ;;  %vm888_vm5 = vcmp.ge.s32.totalorder %v1565_v9, %v886_v61 }
 0x259   :  { %554 = vst.msk [vmem:[#allocation3 + $0x1] sm:$0xff] %vm157_vm3, %v543_v1  ;;  %v1239_v4 = vpop.f32.mrb[2].mxu1  ;;  %v1261_v5 = vpop.f32.mrb[10].mxu0  ;;  %vm894_vm7 = vcmp.lt.s32.totalorder %v1565_v9, %v892_v63 }
 0x25a   :  { %v546_v6 = vmax.f32 %v1239_v4, %v1261_v5  ;;  %v425_v8 = vpop.f32.mrb[3].mxu1  ;;  %v534_v10 = vpop.f32.mrb[11].mxu0  ;;  %vm1665_vm6 = vcmp.lt.s32.totalorder %v1565_v9, %v891_v62  ;;  %vm896_vm9 = vmand %vm888_vm5, %vm894_vm7 }
 0x25b   :  { %v545_v13 = vmax.f32 %v425_v8, %v534_v10  ;;  %v1414_v10 = vmov 0.0|0.0  }
 0x25c   :  { %558 = vst.msk [vmem:[#allocation3 + $0x21] sm:$0xff] %vm157_vm3, %v546_v6 }
 0x25d   :  { %557 = vst.msk [vmem:[#allocation3 + $0x19] sm:$0xff] %vm157_vm3, %v545_v13  ;;  %v900_v13 = vsub.s32 %v1565_v9, %v1583_v32 }
 0x25f   :  { %v564_v14 = vld [vmem:[#allocation3 + $0x9] sm:$0xff] }
 0x260   :  { %577 = vrot.lane.b32.xlu1 %v564_v14, %s1410_s0  ;;  %v563_v15 = vld [vmem:[#allocation3 + $0x1] sm:$0xff]  ;;  %v568_v16 = vld [vmem:[#allocation3 + $0xa] sm:$0xff]  ;;  %v899_v14 = vsub.s32 %v1565_v9, %v1562_v7 }
 0x261   :  { %575 = vrot.lane.b32.xlu0 %v563_v15, %s1410_s0  ;;  %v567_v17 = vld [vmem:[#allocation3 + $0x2] sm:$0xff]  ;;  %v902_v15 = vand.u32 7, %v900_v13 }
 0x262   :  { %v559_v24 = vld [vmem:[#allocation3] sm:$0xff]  ;;  %v560_v26 = vld [vmem:[#allocation3 + $0x8] sm:$0xff] }
 0x263   :  { %v566_v18 = vld [vmem:[#allocation3 + $0x21] sm:$0xff]  ;;  %vm904_vm12 = vcmp.eq.s32.totalorder %v902_v15, 0 }
 0x264   :  { %593 = vrot.lane.b32.xlu1 %v568_v16, %s1412_s3  ;;  %v565_v19 = vld [vmem:[#allocation3 + $0x19] sm:$0xff]  ;;  %v570_v20 = vld [vmem:[#allocation3 + $0x22] sm:$0xff]  ;;  %v901_v16 = vand.u32 7, %v899_v14 }
 0x265   :  { %591 = vrot.lane.b32.xlu0 %v567_v17, %s1412_s3  ;;  %v569_v21 = vld [vmem:[#allocation3 + $0x1a] sm:$0xff]  ;;  %v906_v17 = vsel %vm904_vm12, 1.0, %v1408_v3 }
 0x266   :  { %v561_v35 = vld [vmem:[#allocation3 + $0x18] sm:$0xff]  ;;  %v562_v37 = vld [vmem:[#allocation3 + $0x20] sm:$0xff]  ;;  %vm903_vm13 = vcmp.eq.s32.totalorder %v901_v16, 0 }
 0x268   :  { %581 = vrot.lane.b32.xlu1 %v566_v18, %s1410_s0  ;;  %v905_v18 = vsel %vm903_vm13, 1.0, %v1408_v3 }
 0x269   :  { %579 = vrot.lane.b32.xlu0 %v565_v19, %s1410_s0 }
 0x26c   :  { %597 = vrot.lane.b32.xlu1 %v570_v20, %s1412_s3 }
 0x26d   :  { %595 = vrot.lane.b32.xlu0 %v569_v21, %s1412_s3 }
 0x2d2   :  { %v578_v22 = vpop.permute.xlu1 %577 }
 0x2d3   :  { %v576_v23 = vpop.permute.xlu0 %575  ;;  %v604_v29 = vsel %vm157_vm3, %v560_v26, %v578_v22 }
 0x2d4   :  { %v603_v27 = vsel %vm157_vm3, %v559_v24, %v576_v23 }
 0x2d6   :  { %v594_v25 = vpop.permute.xlu1 %593 }
 0x2d7   :  { %v592_v28 = vpop.permute.xlu0 %591  ;;  %v609_v31 = vsel %vm607_vm1, %v604_v29, %v594_v25 }
 0x2d8   :  { %v608_v30 = vsel %vm607_vm1, %v603_v27, %v592_v28 }
 0x2d9   :  { %1268 = vmatprep.mubr.msk.f32.mxu1 %vm622_vm2, %v608_v30 }
 0x2da   :  { %1269 = vmatmul.mubr.msk.f32.vlgmr.msra.gmra.mrb[4].mxu1 %vm622_vm2, %v609_v31  ;;  %v582_v33 = vpop.permute.xlu1 %581 }
 0x2db   :  { %v580_v34 = vpop.permute.xlu0 %579  ;;  %v606_v40 = vsel %vm157_vm3, %v562_v37, %v582_v33 }
 0x2dc   :  { %v605_v38 = vsel %vm157_vm3, %v561_v35, %v580_v34  ;;  %vm1659_vm3 = vcmp.ge.s32.totalorder %v1565_v9, %v885_v60  ;;  %v1140_v9 = vld [vmem:[%s1718_s5] ss:$0 sm:$0xff] }
 0x2dd   :  { %vm895_vm8 = vmand %vm1659_vm3, %vm1665_vm6 }
 0x2de   :  { %v598_v36 = vpop.permute.xlu1 %597  ;;  %vm1368_vm10 = vmpackc.low %vm896_vm9, %vm895_vm8  ;;  %v897_v7 = vsel %vm895_vm8, 1.0, %v1408_v3 }
 0x2df   :  { %v596_v39 = vpop.permute.xlu0 %595  ;;  %v611_v42 = vsel %vm607_vm1, %v606_v40, %v598_v36 }
 0x2e0   :  { %v610_v41 = vsel %vm607_vm1, %v605_v38, %v596_v39 }
 0x2e1   :  { %1271 = vmatprep.mubr.msk.f32.mxu1 %vm622_vm2, %v610_v41 }
 0x2e2   :  { %1272 = vmatmul.mubr.msk.f32.gmra.mrb[6].mxu1 %vm622_vm2, %v611_v42 }
 0x2e3   :  { %1293 = vmatprep.mubr.msk.f32.mxu1 %vm724_vm4, %v1573_v12 }
 0x3ad   :  { %v1270_v44 = vpop.f32.mrb[4].mxu1 }
 0x3ae   :  { %v707_v45 = vadd.f32 %v1270_v44, %v1126_v43  ;;  %v701_v46 = vpop.f32.mrb[5].mxu1 }
 0x3af   :  { %v702_v47 = vadd.f32 %v1126_v43, %v701_v46 }
 0x3b0   :  { %v721_v48 = vmax.f32 %v707_v45, 0.0 }
 0x3b1   :  { %v720_v49 = vmax.f32 %v702_v47, 0.0 }
 0x3b3   :  { %v1352_v50 = vpack.c.bf16 %v721_v48, %v720_v49 }
 0x3b5   :  { %v1273_v53 = vpop.f32.mrb[6].mxu1  ;;  %1353 = vmatprep.subr.bf16.mxu0 %v1352_v50  ;;  %1361 = vmatprep.subr.bf16.mxu1 %v1352_v50 }
 0x3b6   :  { %v717_v54 = vadd.f32 %v1273_v53, %v1126_v43  ;;  %v711_v55 = vpop.f32.mrb[7].mxu1  ;;  %1355 = vmatpush3.bf16.msra.mxu0 %v1352_v50  ;;  %1363 = vmatpush3.bf16.msra.mxu1 %v1352_v50 }
 0x3b7   :  { %v712_v11 = vadd.f32 %v1126_v43, %v711_v55 }
 0x3b8   :  { %v723_v12 = vmax.f32 %v717_v54, 0.0 }
 0x3b9   :  { %v722_v56 = vmax.f32 %v712_v11, 0.0 }
 0x3bb   :  { %v1356_v57 = vpack.c.bf16 %v723_v12, %v722_v56 }
 0x3bd   :  { %1357 = vmatprep.subr.bf16.mxu0 %v1356_v57  ;;  %1365 = vmatprep.subr.bf16.mxu1 %v1356_v57 }
 0x3be   :  { %1359 = vmatpush3.bf16.msra.mxu0 %v1356_v57  ;;  %1367 = vmatpush3.bf16.msra.mxu1 %v1356_v57 }
 0x3c1   :  { %1283 = vmatmul.mubr.msk.f32.vlgmr.msra.gmra.mrb[12].mxu0 %vm724_vm4, %v1593_v51  ;;  %1294 = vmatmul.mubr.msk.f32.vlgmr.msra.gmra.mrb[8].mxu1 %vm724_vm4, %v1596_v52  ;;  %v1413_v52 = vmov 1.0|1.0  }
 0x3c2   :  { %1369 = vmatprep.subr.msk.bf16.mxu0 %vm1368_vm10, %v1413_v52 }
 0x3c3   :  { %1371 = vmatpush3.bf16.msk.msra.mxu0 %vm1368_vm10, %v1413_v52 }
 0x3c4   :  { %1372 = vmatprep.subr.bf16.mxu0 %v1414_v10 }
 0x494   :  { %v1284_v1 = vpop.f32.mrb[12].mxu0  ;;  %v1295_v2 = vpop.f32.mrb[8].mxu1 }
 0x495   :  { %v884_v4 = vmax.f32 %v1284_v1, %v1295_v2  ;;  %v795_v5 = vpop.f32.mrb[13].mxu0  ;;  %v874_v6 = vpop.f32.mrb[9].mxu1 }
 0x496   :  { %v883_v8 = vmax.f32 %v795_v5, %v874_v6 }
 0x498   :  { %1300 = vmatprep.mubr.msk.f32.mxu0 %vm607_vm1, %v883_v8 }
 0x499   :  { %1301 = vmatmul.mubr.msk.f32.vlgmr.msra.gmra.mrb[14].mxu0 %vm607_vm1, %v884_v4 }
 0x49a   :  { %1307 = vmatprep.mubr.msk.f32.mxu0 %vm1415_vm11, %v1408_v3 }
 0x56c   :  { %v1302_v19 = vpop.f32.mrb[14].mxu0 }
 0x56d   :  { %v989_v20 = vmul.f32 %v1302_v19, %v906_v17  ;;  %v979_v21 = vpop.f32.mrb[15].mxu0 }
 0x56e   :  { %v988_v22 = vmul.f32 %v979_v21, %v905_v18 }
 0x570   :  { %v1373_v23 = vpack.c.bf16 %v989_v20, %v988_v22 }
 0x572   :  { %1374 = vmatpush3.bf16.msra.mxu0 %v1373_v23 }
 0x575   :  { %1308 = vmatmul.mubr.msk.f32.vlgmr.msra.gmra.mrb[16].mxu0 %vm607_vm1, %v897_v7 }
 0x648   :  { %v1059_v32 = vpop.f32.mrb[16].mxu0 }
 0x649   :  { %v1071_v24 = vmul.f32 %v1140_v9, %v1059_v32  ;;  %1063 = vst [vmem:[#allocation5] sm:$0x3] %v1059_v32  ;;  %v1309_v25 = vpop.f32.mrb[17].mxu0 }
 0x64b   :  { %v1073_v26 = vsel %vm1072_vm14, %v1071_v24, 0.0 }
 0x64c   :  { %1074 = vadd.xlane.f32.xlu0 %v1073_v26 }
 0x64d   :  { %1395 = shalt.err (!%p1392_p4)
}
 0x64e   :  { %s1396_s5 = scalar_lea.hbm %s1721_s8, 32 }
 0x64f   :  { %p1397_p5 = scmp.ne.s32.totalorder %s1721_s8, %s1396_s5  ;;  %p1400_p6 = scmp.lt.u32.totalorder %s1396_s5, %s1721_s8 }
 0x651   :  { %p1402_p7 = pnand %p1400_p6, %p1397_p5 }
 0x653   :  { %1405 = shalt.err (!%p1402_p7)
}
 0x654   :  { %1097 = dma.vmem_to_hbm [thread:$0]  %s1095_s14, 32, %s1721_s8, [#allocation6]   ;;  %v1141_v3 = vld [vmem:[#allocation4] ss:$0 sm:$0xff]  ;;  %vm1084_vm15 = vcmask 1024  }
 0x6d9   :  { %v1075_v27 = vpop.xlane.xlu0 %1074 }
 0x6da   :  { %v1083_v28 = vadd.f32 %v1141_v3, %v1075_v27 }
 0x6dc   :  { %1085 = vst.msk [vmem:[%s1720_s7] sm:$0x3] %vm1084_vm15, %v1083_v28 }
 0x6dd   :  { %1406 = dma.done.wait [#allocation6], 32  }
 0x6de   :  { %1407 = vsyncadd [#allocation6], 4294967264 }
 0x6df   :  { %1103 = vsyncpa [#allocation6], 1 }

</bundles_post_ra>
